<compile_context>
chip_gen: v5e
topology: v5e:2x2
jax: 0.10.0
libtpu: 0.0.40
codegen_flags: <defaults>
</compile_context>

<pallas_src>
import math
import jax
import jax.numpy as jnp
from jax.experimental import pallas as pl
from jax.experimental.pallas import tpu as pltpu


_VMEM_LIMIT = 48 * 1024 * 1024    # explicit scoped-VMEM limit (v5e default is 16 MiB)
_VMEM_BUDGET = 20 * 1024 * 1024   # target per-step footprint used by the tile chooser


# ---------------------------------------------------------------------------
# helpers
# ---------------------------------------------------------------------------

def _divisors(n, cap=None, *, even=False):
    cap = n if cap is None else min(n, cap)
    out = [d for d in range(1, cap + 1) if n % d == 0 and (not even or d % 2 == 0)]
    return out or [n]


def _largest_divisor(n, cap, *, even=False):
    return _divisors(n, cap, even=even)[-1]


def _conv_vmem_estimate(TH, W, Cin, TC, n_out, pooled):
    bf = 2
    band = (TH + 2) * W * Cin * bf
    io_in = 2 * band                                   # double-buffered band + halos
    io_w = 2 * (9 * Cin * TC * bf)                     # double-buffered weight tile
    oh, ow = (TH // 2, W // 2) if pooled else (TH, W)
    io_out = 2 * n_out * oh * ow * TC * bf
    scratch = 4 * band                                 # assembled band + 3x dx-widened band
    acc = 2 * TH * W * TC * 4                          # f32 accumulator + matmul result
    return io_in + io_w + io_out + scratch + acc


def _pick_row_tile(H, W, Cin, TC, n_out, *, cap, even, pooled, budget):
    cands = _divisors(H, cap, even=even)
    best = cands[0]
    for d in cands:
        if _conv_vmem_estimate(d, W, Cin, TC, n_out, pooled) <= budget:
            best = d
    return best


def _to_feature(x_nhwc):
    # NCHW f32 to match the PyTorch module's output structurally.
    # TODO(synk): consumers that accept NHWC bf16 features could skip this pass.
    return jnp.transpose(x_nhwc, (0, 3, 1, 2)).astype(jnp.float32)


def _im2col_3x3(x):
    """(N, H, W, C) -> (N, H, W, 9*C); taps in (dy, dx) row-major order.
    Only used for the tiny Cin=3 first layer."""
    n, h, w, c = x.shape
    xp = jnp.pad(x, ((0, 0), (1, 1), (1, 1), (0, 0)))
    taps = [xp[:, dy:dy + h, dx:dx + w, :] for dy in range(3) for dx in range(3)]
    return jnp.concatenate(taps, axis=-1)


# ---------------------------------------------------------------------------
# Pallas kernels
# ---------------------------------------------------------------------------

def conv3x3_im2col(x, wmat, b, *, relu, emit_pre=False, row_tile_cap=32):
    """First conv (Cin = 3): im2col in the wrapper (K = 27) + a single
    lane-dense matmul kernel with fused bias / ReLU epilogue.

    x    : (N, H, W, Cin=3) bf16
    wmat : (9*Cin, Cout)    bf16
    b    : (1, Cout)        f32
    """
    N, H, W, Cin = x.shape
    K, Cout = wmat.shape
    xc = _im2col_3x3(x)                                  # (N, H, W, 27) bf16
    TH = _largest_divisor(H, row_tile_cap)
    nH = H // TH

    def kernel(x_ref, w_ref, b_ref, *o_refs):
        lhs = x_ref[0].reshape(TH * W, K)                # bf16
        res = jnp.dot(lhs, w_ref[...], preferred_element_type=jnp.float32)
        res = (res + b_ref[...]).reshape(TH, W, Cout)    # f32 epilogue
        if emit_pre:
            o_refs[0][0] = res.astype(o_refs[0].dtype)
            o_refs[1][0] = jnp.maximum(res, 0.0).astype(o_refs[1].dtype)
        else:
            out = jnp.maximum(res, 0.0) if relu else res
            o_refs[0][0] = out.astype(o_refs[0].dtype)

    o_spec = pl.BlockSpec((1, TH, W, Cout), lambda n, h: (n, h, 0, 0))
    o_shape = jax.ShapeDtypeStruct((N, H, W, Cout), jnp.bfloat16)
    out_shape = (o_shape, o_shape) if emit_pre else o_shape
    out_specs = [o_spec, o_spec] if emit_pre else o_spec

    return pl.pallas_call(
        kernel,
        out_shape=out_shape,
        grid=(N, nH),
        in_specs=[pl.BlockSpec((1, TH, W, K), lambda n, h: (n, h, 0, 0)),
                  pl.BlockSpec((K, Cout), lambda n, h: (0, 0)),
                  pl.BlockSpec((1, Cout), lambda n, h: (0, 0))],
        out_specs=out_specs,
        compiler_params=pltpu.CompilerParams(
            dimension_semantics=("parallel", "parallel"),
            vmem_limit_bytes=_VMEM_LIMIT),
    )(xc, wmat, b)


def conv3x3_bias_act(x, w3, b, *, relu, pool=False, emit_pre=False,
                     row_tile_cap=32, cout_tile_cap=512):
    """3x3 / stride-1 / pad-1 conv with fused bias, ReLU and (optionally) the
    following 2x2 max-pool, one pass over the activation.

    x  : (N, H, W, Cin)    bf16  (NHWC)
    w3 : (3, 3*Cin, Cout)  bf16  (dy-major; K blocks ordered dx = 0, 1, 2)
    b  : (1, Cout)         f32
    """
    N, H, W, Cin = x.shape
    Cout = w3.shape[-1]
    if pool and (H % 2 or W % 2):
        raise NotImplementedError("fused max-pool needs even H and W")
    if pool and emit_pre:
        raise ValueError("pool fusion and pre-ReLU output are mutually exclusive")

    TC = Cout if Cout <= cout_tile_cap else cout_tile_cap
    assert Cout % TC == 0 and (TC == Cout or TC % 128 == 0)
    nC = Cout // TC
    n_out = 2 if emit_pre else 1
    TH = _pick_row_tile(H, W, Cin, TC, n_out, cap=row_tile_cap, even=pool,
                        pooled=pool, budget=_VMEM_BUDGET)
    nH = H // TH

    def kernel(top_ref, main_ref, bot_ref, w_ref, b_ref, *o_refs):
        h = pl.program_id(2)
        dt = main_ref.dtype
        # Halo rows come from the *unpadded* activation (the index map clamps
        # the row index at the image border); zero them on the first / last
        # band so they act as the conv's zero padding.
        top_keep = jnp.where(h == 0, 0.0, 1.0).astype(dt)
        bot_keep = jnp.where(h == nH - 1, 0.0, 1.0).astype(dt)
        top = top_ref[0] * top_keep                                  # (1, W, Cin)
        bot = bot_ref[0] * bot_keep                                  # (1, W, Cin)
        band = jnp.concatenate([top, main_ref[0], bot], axis=0)      # (TH+2, W, Cin)

        # dx: three width-shifted bf16 copies of the band (zero edge columns
        # double as the width padding).  dy: free leading-dim slices below.
        # K is merged to 3*Cin so each dy is a single MXU matmul.
        zc = jnp.zeros((TH + 2, 1, Cin), dt)
        left = jnp.concatenate([zc, band[:, :W - 1, :]], axis=1)     # col j-1 (dx=0)
        right = jnp.concatenate([band[:, 1:, :], zc], axis=1)        # col j+1 (dx=2)
        bandc = jnp.concatenate([left, band, right], axis=-1)        # (TH+2, W, 3*Cin)

        acc = jnp.zeros((TH * W, TC), jnp.float32)
        for dy in range(3):
            lhs = bandc[dy:dy + TH].reshape(TH * W, 3 * Cin)          # bf16
            acc = acc + jnp.dot(lhs, w_ref[dy],
                                preferred_element_type=jnp.float32)
        res = (acc + b_ref[...]).reshape(TH, W, TC)                   # f32 epilogue

        if emit_pre:
            o_refs[0][0] = res.astype(o_refs[0].dtype)
            o_refs[1][0] = jnp.maximum(res, 0.0).astype(o_refs[1].dtype)
            return

        out = jnp.maximum(res, 0.0) if relu else res
        out = out.astype(o_refs[0].dtype)                             # bf16
        if pool:
            hp = out.reshape(TH, W // 2, 2 * TC)                      # lane-pair view
            hm = jnp.maximum(hp[:, :, :TC], hp[:, :, TC:])            # horizontal max
            vp = hm.reshape(TH // 2, 2, W // 2, TC)
            out = jnp.maximum(vp[:, 0], vp[:, 1])                     # vertical max
        o_refs[0][0] = out

    in_specs = [
        # 1-row top halo (row h*TH - 1, clamped at 0)
        pl.BlockSpec((1, 1, W, Cin),
                     lambda c, n, h: (n, jnp.maximum(h * TH - 1, 0), 0, 0)),
        # TH-row main band
        pl.BlockSpec((1, TH, W, Cin), lambda c, n, h: (n, h, 0, 0)),
        # 1-row bottom halo (row (h+1)*TH, clamped at H-1)
        pl.BlockSpec((1, 1, W, Cin),
                     lambda c, n, h: (n, jnp.minimum((h + 1) * TH, H - 1), 0, 0)),
        # weight tile: block index constant across (n, h) -> stays resident
        pl.BlockSpec((3, 3 * Cin, TC), lambda c, n, h: (0, 0, c)),
        pl.BlockSpec((1, TC), lambda c, n, h: (0, c)),
    ]

    if emit_pre:
        out_shape = (jax.ShapeDtypeStruct((N, H, W, Cout), jnp.bfloat16),
                     jax.ShapeDtypeStruct((N, H, W, Cout), jnp.bfloat16))
        out_specs = [pl.BlockSpec((1, TH, W, TC), lambda c, n, h: (n, h, 0, c)),
                     pl.BlockSpec((1, TH, W, TC), lambda c, n, h: (n, h, 0, c))]
    elif pool:
        out_shape = jax.ShapeDtypeStruct((N, H // 2, W // 2, Cout), jnp.bfloat16)
        out_specs = pl.BlockSpec((1, TH // 2, W // 2, TC),
                                 lambda c, n, h: (n, h, 0, c))
    else:
        out_shape = jax.ShapeDtypeStruct((N, H, W, Cout), jnp.bfloat16)
        out_specs = pl.BlockSpec((1, TH, W, TC), lambda c, n, h: (n, h, 0, c))

    return pl.pallas_call(
        kernel,
        out_shape=out_shape,
        grid=(nC, N, nH),          # Cout-tile axis outermost
        in_specs=in_specs,
        out_specs=out_specs,
        compiler_params=pltpu.CompilerParams(
            dimension_semantics=("parallel", "parallel", "parallel"),
            vmem_limit_bytes=_VMEM_LIMIT),
    )(x, x, x, w3, b)


def maxpool2x2(x, *, row_tile_cap=32):
    """Standalone 2x2 stride-2 max pool (used only when it cannot be fused
    into the preceding conv); single pass over the input."""
    N, H, W, C = x.shape
    if H % 2 or W % 2:
        raise NotImplementedError("maxpool2x2 requires even H and W")
    Ho, Wo = H // 2, W // 2
    TH = _largest_divisor(H, row_tile_cap, even=True)
    nH = H // TH
    # Free contiguous relabel: each horizontal 2x1 pair becomes 2*C channels.
    xw = x.reshape(N, H, Wo, 2 * C)

    def kernel(x_ref, o_ref):
        xv = x_ref[0]                                      # (TH, Wo, 2C)
        hm = jnp.maximum(xv[:, :, :C], xv[:, :, C:])       # horizontal max
        vp = hm.reshape(TH // 2, 2, Wo, C)
        o_ref[0] = jnp.maximum(vp[:, 0], vp[:, 1])         # vertical max

    return pl.pallas_call(
        kernel,
        out_shape=jax.ShapeDtypeStruct((N, Ho, Wo, C), x.dtype),
        grid=(N, nH),
        in_specs=[pl.BlockSpec((1, TH, Wo, 2 * C), lambda n, h: (n, h, 0, 0))],
        out_specs=pl.BlockSpec((1, TH // 2, Wo, C), lambda n, h: (n, h, 0, 0)),
        compiler_params=pltpu.CompilerParams(
            dimension_semantics=("parallel", "parallel")),
    )(xw)


def relu_pallas(x, *, row_tile_cap=64):
    """Fallback standalone ReLU (unreachable for VGG defs: ReLU is always
    fused into the preceding conv)."""
    N, H, W, C = x.shape
    TH = _largest_divisor(H, row_tile_cap)
    spec = pl.BlockSpec((1, TH, W, C), lambda n, h: (n, h, 0, 0))

    def kernel(x_ref, o_ref):
        o_ref[...] = jnp.maximum(x_ref[...], 0)

    return pl.pallas_call(
        kernel,
        out_shape=jax.ShapeDtypeStruct(x.shape, x.dtype),
        grid=(N, H // TH),
        in_specs=[spec],
        out_specs=spec,
        compiler_params=pltpu.CompilerParams(
            dimension_semantics=("parallel", "parallel")),
    )(x)


# ---------------------------------------------------------------------------
# VGG19 feature extractor (mirrors torchvision.models.vgg19().features)
# ---------------------------------------------------------------------------

_VGG19_CFG = [64, 64, 'M', 128, 128, 'M', 256, 256, 256, 256, 'M',
              512, 512, 512, 512, 'M', 512, 512, 512, 512, 'M']


def vgg19_layer_defs(max_index):
    defs = []
    in_ch = 3
    for v in _VGG19_CFG:
        if v == 'M':
            defs.append(('pool', None))
        else:
            defs.append(('conv', (in_ch, v)))
            defs.append(('relu', None))
            in_ch = v
        if len(defs) > max_index:
            break
    return defs[:max_index + 1]


class VGG19FeaturesPallas:
    """Pallas equivalent of the PyTorch VGG19Features module."""

    def __init__(self, layers, key, *, max_row_tile=32, max_cout_tile=512):
        self.layers = set(int(l) for l in layers)
        self.max_row_tile = max_row_tile
        self.max_cout_tile = max_cout_tile
        self.defs = vgg19_layer_defs(max(self.layers))
        self.params = []
        for kind, spec in self.defs:
            if kind == 'conv':
                cin, cout = spec
                key, kw, kb = jax.random.split(key, 3)
                # Deterministic synthetic weights, torch layout (Cout, Cin, 3, 3).
                w = jax.random.normal(kw, (cout, cin, 3, 3), jnp.float32)
                w = w * (1.0 / math.sqrt(cin * 9))
                bias = jax.random.normal(kb, (cout,), jnp.float32) * 0.01
                w_hwio = jnp.transpose(w, (2, 3, 1, 0)).astype(jnp.bfloat16)
                if cin <= 8:   # first layer: im2col, K = 9*Cin
                    mode, w_k = 'im2col', w_hwio.reshape(9 * cin, cout)
                else:          # dy-major, K merged over dx: (3, 3*Cin, Cout)
                    mode, w_k = 'direct', w_hwio.reshape(3, 3 * cin, cout)
                self.params.append(dict(mode=mode, w=w_k, w_hwio=w_hwio,
                                        b=bias.reshape(1, cout)))
            else:
                self.params.append(None)

    def __call__(self, x_nchw):
        # NCHW f32 -> NHWC bf16 (activations travel HBM<->HBM in bf16).
        x = jnp.transpose(x_nchw, (0, 2, 3, 1)).astype(jnp.bfloat16)
        feats = []
        n = len(self.defs)
        i = 0
        while i < n:
            kind, _ = self.defs[i]
            if kind == 'conv':
                p = self.params[i]
                has_relu = i + 1 < n and self.defs[i + 1][0] == 'relu'
                has_pool = has_relu and i + 2 < n and self.defs[i + 2][0] == 'pool'
                want_pre = i in self.layers
                want_post = has_relu and (i + 1) in self.layers
                emit_pre = want_pre and has_relu
                fuse_pool = (has_pool and not want_pre and not want_post
                             and p['mode'] == 'direct')

                if p['mode'] == 'im2col':
                    outs = conv3x3_im2col(
                        x, p['w'], p['b'], relu=has_relu, emit_pre=emit_pre,
                        row_tile_cap=self.max_row_tile)
                else:
                    outs = conv3x3_bias_act(
                        x, p['w'], p['b'], relu=has_relu, pool=fuse_pool,
                        emit_pre=emit_pre, row_tile_cap=self.max_row_tile,
                        cout_tile_cap=self.max_cout_tile)

                if emit_pre:
                    pre, post = outs
                    feats.append(_to_feature(pre))          # want_pre is True here
                    x = post
                    if want_post:
                        feats.append(_to_feature(x))
                    i += 2
                else:
                    x = outs
                    if fuse_pool:
                        if (i + 2) in self.layers:
                            feats.append(_to_feature(x))
                        i += 3
                    elif has_relu:
                        if want_post:
                            feats.append(_to_feature(x))
                        i += 2
                    else:
                        if want_pre:
                            feats.append(_to_feature(x))
                        i += 1
            elif kind == 'pool':
                x = maxpool2x2(x, row_tile_cap=self.max_row_tile)
                if i in self.layers:
                    feats.append(_to_feature(x))
                i += 1
            else:  # standalone relu (not produced by the VGG config; fallback)
                x = relu_pallas(x)
                if i in self.layers:
                    feats.append(_to_feature(x))
                i += 1
        return feats


# ---------------------------------------------------------------------------
# Pure-JAX reference (correctness check only; mirrors the bf16 hand-offs)
# ---------------------------------------------------------------------------

def ref_forward(x_nchw, model):
    x = jnp.transpose(x_nchw, (0, 2, 3, 1)).astype(jnp.bfloat16)
    feats = []
    for i, (kind, _) in enumerate(model.defs):
        if kind == 'conv':
            p = model.params[i]
            y = jax.lax.conv_general_dilated(
                x, p['w_hwio'], window_strides=(1, 1), padding='SAME',
                dimension_numbers=('NHWC', 'HWIO', 'NHWC'),
                preferred_element_type=jnp.float32)
            x = (y + p['b'].reshape(1, 1, 1, -1)).astype(jnp.bfloat16)
        elif kind == 'relu':
            x = jnp.maximum(x, 0)
        else:
            x = jax.lax.reduce_window(
                x, jnp.array(-jnp.inf, x.dtype), jax.lax.max,
                (1, 2, 2, 1), (1, 2, 2, 1), 'VALID')
        if i in model.layers:
            feats.append(jnp.transpose(x, (0, 3, 1, 2)).astype(jnp.float32))
    return feats


# ---------------------------------------------------------------------------

if __name__ == "__main__":
    key = jax.random.PRNGKey(0)
    k_in, k_params = jax.random.split(key)

    # relu1_1, conv1_2 (pre-ReLU), relu2_1, relu3_1 — exercises fused
    # conv+relu, dual (pre/post-ReLU) outputs, standalone pool, and fused
    # conv+relu+pool paths.
    layer_indices = [1, 2, 6, 11]
    # max_row_tile=16 exercises the row-band tiling / halo logic at this size.
    model = VGG19FeaturesPallas(layer_indices, k_params, max_row_tile=16)

    x = jax.random.normal(k_in, (2, 3, 32, 32), jnp.float32)   # NCHW, small

    feats = model(x)
    feats = [jax.block_until_ready(f) for f in feats]

    ref = ref_forward(x, model)
    assert len(feats) == len(ref), (len(feats), len(ref))
    for f, r in zip(feats, ref):
        assert f.shape == r.shape, (f.shape, r.shape)
        err = float(jnp.max(jnp.abs(f - r)))
        scale = float(jnp.max(jnp.abs(r))) + 1e-6
        assert err <= 5e-2 * scale + 1e-4, (err, scale)

    print("KERNEL_OK")
</pallas_src>

<mosaic_0001>
module attributes {stable_mosaic.version = 11 : i64} {
  func.func @kernel(%arg0: i32, %arg1: i32, %arg2: memref<1x16x32x27xbf16, #tpu.memory_space<vmem>>, %arg3: memref<27x64xbf16, #tpu.memory_space<vmem>>, %arg4: memref<1x64xf32, #tpu.memory_space<vmem>>, %arg5: memref<1x16x32x64xbf16, #tpu.memory_space<vmem>>) attributes {dimension_semantics = [#tpu.dimension_semantics<parallel>, #tpu.dimension_semantics<parallel>], iteration_bounds = array<i64: 2, 2>, scalar_prefetch = 0 : i64, scratch_operands = 0 : i64, tpu.core_type = #tpu.core_type<tc>, window_params = [{transform_indices = @transform_0, window_bounds = array<i64: 1, 16, 32, 27>}, {pipeline_mode = #tpu.pipeline_mode<synchronous>, transform_indices = @transform_1, window_bounds = array<i64: 27, 64>}, {pipeline_mode = #tpu.pipeline_mode<synchronous>, transform_indices = @transform_2, window_bounds = array<i64: 1, 64>}, {transform_indices = @transform_3, window_bounds = array<i64: 1, 16, 32, 64>}]} {
    %c0 = arith.constant 0 : index
    %c0_0 = arith.constant 0 : index
    %c0_1 = arith.constant 0 : index
    %c0_2 = arith.constant 0 : index
    %0 = vector.load %arg2[%c0, %c0_0, %c0_1, %c0_2] : memref<1x16x32x27xbf16, #tpu.memory_space<vmem>>, vector<1x16x32x27xbf16>
    %1 = vector.shape_cast %0 : vector<1x16x32x27xbf16> to vector<16x32x27xbf16>
    %2 = vector.shape_cast %1 : vector<16x32x27xbf16> to vector<512x27xbf16>
    %c0_3 = arith.constant 0 : index
    %c0_4 = arith.constant 0 : index
    %3 = vector.load %arg3[%c0_3, %c0_4] : memref<27x64xbf16, #tpu.memory_space<vmem>>, vector<27x64xbf16>
    %cst = arith.constant dense<0.000000e+00> : vector<512x64xf32>
    %4 = tpu.matmul %2, %3, %cst {dimension_numbers = #tpu.dot_dimension_numbers<[1], [0], [0], [1], [0, 0, 1, 1], [], []>} : vector<512x27xbf16>, vector<27x64xbf16>, vector<512x64xf32> -> vector<512x64xf32>
    %c0_5 = arith.constant 0 : index
    %c0_6 = arith.constant 0 : index
    %5 = vector.load %arg4[%c0_5, %c0_6] : memref<1x64xf32, #tpu.memory_space<vmem>>, vector<1x64xf32>
    %6 = vector.broadcast %5 : vector<1x64xf32> to vector<512x64xf32>
    %7 = arith.addf %4, %6 : vector<512x64xf32>
    %8 = vector.shape_cast %7 : vector<512x64xf32> to vector<16x32x64xf32>
    %cst_7 = arith.constant 0.000000e+00 : f32
    %9 = vector.broadcast %cst_7 : f32 to vector<16x32x64xf32>
    %10 = arith.maximumf %8, %9 : vector<16x32x64xf32>
    %11 = arith.truncf %10 : vector<16x32x64xf32> to vector<16x32x64xbf16>
    %c0_8 = arith.constant 0 : index
    %c0_9 = arith.constant 0 : index
    %c0_10 = arith.constant 0 : index
    %c0_11 = arith.constant 0 : index
    %12 = vector.load %arg5[%c0_8, %c0_9, %c0_10, %c0_11] : memref<1x16x32x64xbf16, #tpu.memory_space<vmem>>, vector<1x16x32x64xbf16>
    %13 = vector.shape_cast %12 : vector<1x16x32x64xbf16> to vector<16x32x64xbf16>
    %14 = vector.shape_cast %11 : vector<16x32x64xbf16> to vector<1x16x32x64xbf16>
    tpu.vector_store %arg5[%c0_8, %c0_9, %c0_10, %c0_11], %14 {strides = array<i32>} : memref<1x16x32x64xbf16, #tpu.memory_space<vmem>>, vector<1x16x32x64xbf16>,
    return
  }
  func.func @transform_0(%arg0: i32, %arg1: i32) -> (i32, i32, i32, i32) {
    %c0_i32 = arith.constant 0 : i32
    %c0_i32_0 = arith.constant 0 : i32
    %c0_i32_1 = arith.constant 0 : i32
    return %arg0, %arg1, %c0_i32, %c0_i32_0 : i32, i32, i32, i32
  }
  func.func @transform_1(%arg0: i32, %arg1: i32) -> (i32, i32) {
    %c0_i32 = arith.constant 0 : i32
    %c0_i32_0 = arith.constant 0 : i32
    %c0_i32_1 = arith.constant 0 : i32
    return %c0_i32, %c0_i32_0 : i32, i32
  }
  func.func @transform_2(%arg0: i32, %arg1: i32) -> (i32, i32) {
    %c0_i32 = arith.constant 0 : i32
    %c0_i32_0 = arith.constant 0 : i32
    %c0_i32_1 = arith.constant 0 : i32
    return %c0_i32, %c0_i32_0 : i32, i32
  }
  func.func @transform_3(%arg0: i32, %arg1: i32) -> (i32, i32, i32, i32) {
    %c0_i32 = arith.constant 0 : i32
    %c0_i32_0 = arith.constant 0 : i32
    %c0_i32_1 = arith.constant 0 : i32
    return %arg0, %arg1, %c0_i32, %c0_i32_0 : i32, i32, i32, i32
  }
}

</mosaic_0001>

<bundles_post_ra>
// kernel: tpu_custom_call.1
= control target key start
LH: loop header
LB: loop body
LE: loop exit
PB: predicated region body
PF: predicated region fallthrough
CT: control target
= control target key end

     0   :  { %8 = vsyncpa [#allocation3], 0  ;;  %s1837_s0 = inlined_call_operand.vmem [shape: bf16[2,32,32,27], index: 0, kind: input, shape index: {}]   ;;  %s1838_s1 = inlined_call_operand.vmem [shape: bf16[27,64], index: 1, kind: input, shape index: {}]   ;;  %s1839_s2 = inlined_call_operand.vmem [shape: f32[1,64], index: 2, kind: input, shape index: {}]   ;;  %s1840_s3 = inlined_call_operand.hbm [shape: bf16[2,32,32,64], index: 3, kind: output, shape index: {}]  }
   0x1   :  { %10 = vsyncpa [#allocation3 + $0x1], 0  ;;  %s1437_s12 = smov 0   ;;  %s1439_s13 = smov 0  }
   0x2   :  { %s1441_s14 = smov 0   ;;  %s1443_s15 = smov 0  }
   0x3   :  { %s1445_s16 = smov 0   ;;  %s1447_s17 = smov 0  }
   0x4   :  { %s1449_s18 = smov 0   ;;  %s1451_s19 = smov 0  }
   0x5 LB: > { %s1017_s20 = sadd.s32 4294967295, %s1412_s19   ;;  %s1018_s21 = sadd.s32 4294967294, %s1412_s19   ;;  %s1412_s19 = sphi %s1451_s19, %s16_s19   ;;  %s1408_s18 = sphi %s1449_s18, %s1849_s18   ;;  %s1404_s17 = sphi %s1447_s17, %s1848_s17   ;;  %s1400_s16 = sphi %s1445_s16, %s1847_s16   ;;  %s1396_s15 = sphi %s1443_s15, %s1846_s15   ;;  %s1392_s14 = sphi %s1441_s14, %s1845_s14   ;;  %s1388_s13 = sphi %s1439_s13, %s1844_s13   ;;  %s1384_s12 = sphi %s1437_s12, %s1843_s12  }
   0x6   : > { %s25_s22 = sadd.s32 1, %s1404_s17  ;;  %s28_s23 = sadd.s32 1, %s1408_s18 }
   0x7   : > { %p26_p0 = scmp.ge.s32.totalorder %s25_s22, 2  ;;  %p117_p1 = scmp.ne.s32.totalorder %s1392_s14, %s1388_s13 }
   0x8   : > { %p118_p2 = scmp.eq.s32.totalorder %s1017_s20, 3  ;;  %p123_p5 = scmp.ne.s32.totalorder %s1388_s13, %s1384_s12 }
   0x9   : > { %s1851_s22 = smov (%p26_p0, %s25_s22), 0  ;;  %s1853_s23 = smov (!%p26_p0, %s28_s23), %s1408_s18 }
   0xa   : > { %s103_s24 = ssub.s32 %s1404_s17, %s1851_s22  ;;  %p1488_p3 = por %p118_p2, %p117_p1 }
   0xb   : > { %p30_p4 = scmp.ge.s32.totalorder %s1853_s23, 2  ;;  %p124_p6 = scmp.eq.s32.totalorder %s1018_s21, 3 }
   0xc   : > { %p1021_p7 = scmp.ge.s32.totalorder %s1412_s19, 1  ;;  %p162_p9 = scmp.lt.s32.totalorder %s1412_s19, 5 }
   0xd   : > { %s1855_s23 = smov (%p30_p4, %s1853_s23), 0  ;;  %p1497_p8 = por %p124_p6, %p123_p5 }
   0xe   : > { %s102_s27 = ssub.s32 %s1408_s18, %s1855_s23  ;;  %s107_s28 = sadd.s32 1, %s1392_s14 }
   0xf   : > { %s104_s29 = sor.u32 %s103_s24, %s102_s27  ;;  %p163_p10 = pnand %p1021_p7, %p162_p9 }
  0x10   : > { %p105_p11 = scmp.eq.s32.totalorder %s104_s29, 0  ;;  %s1023_s8 = sshll.u32 (!%p163_p10), %s1396_s15, 4 }
  0x11   : > { %166 = sbr.rel (%p163_p10) target bundleno = 299 (0x12b), region = 32  ;;  %p192_p12 = scmp.lt.s32.totalorder (!%p163_p10), %s1400_s16, 1 }
  0x12   : > { %s1506_s30 = scalar_select %p105_p11, %s1392_s14, %s107_s28  }
  0x13   : > { %p194_p13 = scmp.lt.s32.totalorder (!%p163_p10), %s1023_s8, 31  ;;  %s188_s7 = sand.u32 (!%p163_p10), 1, %s1388_s13  }
  0x14   : > { %s1198_s11 = sshll.u32 (!%p163_p10), %s1400_s16, 7  ;;  %s914_s29 = scalar_lea.sflag (!%p163_p10), [#allocation3], %s188_s7 }
  0x16   : > { %v1161_v0 = vld [vmem:[%s1838_s1 + $0x8] sm:$0xf]  ;;  %v1235_v1 = vld [vmem:[%s1838_s1 + $0x8] sm:$0x30]  ;;  %vm544_vm0 = vcmask 1044480   ;;  %vm545_vm1 = vcmask 1045504  }
  0x17   : > { %v1162_v2 = vor.u32 %v1235_v1, %v1161_v0  ;;  %v1414_v3 = vmov 65535   ;;  %s193_s9 = scalar_select %p192_p12, %s1400_s16, 1  ;;  %v1234_v7 = vld [vmem:[%s1838_s1] sm:$0xff]  ;;  %vm447_vm2 = vcmask 220160   ;;  %vm848_vm3 = vcmask 519168  }
  0x18   : > { %v546_v4 = vsel %vm544_vm0, 4294967295, %v1414_v3  ;;  %s1857_s8 = smov (!%p194_p13, %s1023_s8), 31  ;;  %v1592_v40 = vld [vmem:[%s1839_s2] ss:$0 sm:$0xff] }
  0x19   : > { %v547_v5 = vsel %vm545_vm1, %v546_v4, 0  ;;  %s1025_s10 = sshll.u32 %s193_s9, 7  ;;  %s1024_s21 = sshll.u32 %s1857_s8, 2 }
  0x1a   : > { %v549_v6 = vand.u32 %v1162_v2, %v547_v5  ;;  %s198_s24 = sadd.s32 %s1025_s10, %s1024_s21  ;;  %s1022_s8 = sshll.u32 %s188_s7, 8 }
  0x1b   : > { %s1026_s27 = sshll.u32 %s198_s24, 2  ;;  %s1599_s9 = scalar_lea.vmem [#allocation2], %s1022_s8 }
  0x1c   : > { %557 = vmatpush.bf16.msra.mxu0 %v549_v6  ;;  %1237 = vmatpush.bf16.msra.mxu1 %v549_v6  ;;  %s1523_s4 = scalar_lea.vmem %s1837_s0, %s1026_s27  ;;  %s1236_s10 = sshll.u32 %s1396_s15, 6 }
  0x1d   : > { %1238 = vmatpush.bf16.msra.mxu2 %v549_v6  ;;  %1239 = vmatpush.bf16.msra.mxu3 %v549_v6  ;;  %v1202_v8 = vld [vmem:[%s1523_s4] sm:$0xff]  ;;  %v1203_v12 = vld [vmem:[%s1523_s4 + $0x8] sm:$0xff]  ;;  %v1204_v16 = vld [vmem:[%s1523_s4 + $0x10] sm:$0xff]  ;;  %s926_s20 = sadd.s32 %s1236_s10, %s1198_s11  ;;  %s929_s27 = sshll.u32 %s1599_s9, 4  ;;  %s930_s27 = int_to_ptr.vmem [resolvable:$true] %s929_s27 }
  0x1e   : > { %v1210_v9 = vld [vmem:[%s1523_s4 + $0x40] sm:$0xff]  ;;  %v1211_v13 = vld [vmem:[%s1523_s4 + $0x48] sm:$0xff]  ;;  %v1212_v17 = vld [vmem:[%s1523_s4 + $0x50] sm:$0xff]  ;;  %s1199_s15 = sshll.u32 %s926_s20, 2  ;;  %s1338_s10 = scalar_lea.hbm %s1840_s3, 1024 }
  0x1f   : > { %v1218_v10 = vld [vmem:[%s1523_s4 + $0x80] sm:$0xff]  ;;  %v1219_v14 = vld [vmem:[%s1523_s4 + $0x88] sm:$0xff]  ;;  %v1220_v18 = vld [vmem:[%s1523_s4 + $0x90] sm:$0xff]  ;;  %s928_s24 = scalar_lea.hbm %s1840_s3, %s1199_s15 }
  0x20   : > { %558 = vmatpush.bf16.msra.mxu0 %v1234_v7  ;;  %1240 = vmatpush.bf16.msra.mxu1 %v1234_v7  ;;  %v1226_v11 = vld [vmem:[%s1523_s4 + $0xc0] sm:$0xff]  ;;  %v1227_v15 = vld [vmem:[%s1523_s4 + $0xc8] sm:$0xff]  ;;  %v1228_v19 = vld [vmem:[%s1523_s4 + $0xd0] sm:$0xff]  ;;  %s931_s28 = sshll.u32 %s928_s24, 4  ;;  %s932_s28 = int_to_ptr.hbm [resolvable:$true] %s931_s28 }
  0x21   : > { %1241 = vmatpush.bf16.msra.mxu2 %v1234_v7  ;;  %1242 = vmatpush.bf16.msra.mxu3 %v1234_v7  ;;  %v1205_v20 = vld [vmem:[%s1523_s4 + $0x18] sm:$0xff]  ;;  %v1206_v24 = vld [vmem:[%s1523_s4 + $0x20] sm:$0xff]  ;;  %v1207_v28 = vld [vmem:[%s1523_s4 + $0x28] sm:$0xff] }
  0x22   : > { %v1213_v21 = vld [vmem:[%s1523_s4 + $0x58] sm:$0xff]  ;;  %v1214_v25 = vld [vmem:[%s1523_s4 + $0x60] sm:$0xff]  ;;  %v1215_v29 = vld [vmem:[%s1523_s4 + $0x68] sm:$0xff] }
  0x23   : > { %1163 = vmatmul.msk.bf16.vlgmr.msra.gmra.mxu0 %vm447_vm2, %v1202_v8  ;;  %1171 = vmatmul.msk.bf16.vlgmr.msra.gmra.mxu1 %vm447_vm2, %v1210_v9  ;;  %v1221_v22 = vld [vmem:[%s1523_s4 + $0x98] sm:$0xff]  ;;  %v1222_v26 = vld [vmem:[%s1523_s4 + $0xa0] sm:$0xff]  ;;  %v1223_v30 = vld [vmem:[%s1523_s4 + $0xa8] sm:$0xff] }
  0x24   : > { %1179 = vmatmul.msk.bf16.vlgmr.msra.gmra.mxu2 %vm447_vm2, %v1218_v10  ;;  %1187 = vmatmul.msk.bf16.vlgmr.msra.gmra.mxu3 %vm447_vm2, %v1226_v11  ;;  %v1229_v23 = vld [vmem:[%s1523_s4 + $0xd8] sm:$0xff]  ;;  %v1230_v27 = vld [vmem:[%s1523_s4 + $0xe0] sm:$0xff]  ;;  %v1231_v31 = vld [vmem:[%s1523_s4 + $0xe8] sm:$0xff] }
  0x25   : > { %v1208_v32 = vld [vmem:[%s1523_s4 + $0x30] sm:$0xff]  ;;  %v1209_v36 = vld [vmem:[%s1523_s4 + $0x38] sm:$0xff] }
  0x26   : > { %v1216_v33 = vld [vmem:[%s1523_s4 + $0x70] sm:$0xff]  ;;  %v1217_v37 = vld [vmem:[%s1523_s4 + $0x78] sm:$0xff] }
  0x27   : > { %v1224_v34 = vld [vmem:[%s1523_s4 + $0xb0] sm:$0xff]  ;;  %v1225_v38 = vld [vmem:[%s1523_s4 + $0xb8] sm:$0xff] }
  0x28   : > { %v1232_v35 = vld [vmem:[%s1523_s4 + $0xf0] sm:$0xff]  ;;  %v1233_v39 = vld [vmem:[%s1523_s4 + $0xf8] sm:$0xff]  ;;  %s1332_s4 = sshra.s32 %s932_s28, 4  ;;  %s1333_s4 = int_to_ptr.hbm [resolvable:$true] %s1332_s4 }
  0x29   : > { %s1334_s5 = scalar_lea.hbm %s1333_s4, 256  ;;  %p1339_p4 = scmp.lt.s32.totalorder %s1333_s4, %s1840_s3 }
  0x2a   : > { %p1335_p0 = scmp.ne.s32.totalorder %s1333_s4, %s1334_s5  ;;  %p1340_p5 = scmp.lt.s32.totalorder %s1338_s10, %s1334_s5 }
  0x2c   : > { %p1336_p1 = pnand %p1335_p0, %p1488_p3  ;;  %p1341_p6 = por %p1340_p5, %p1339_p4 }
  0x2e   : > { %p1337_p2 = pneg %p1336_p1 }
  0x30   : > { %p1342_p7 = pnand %p1341_p6, %p1337_p2 }
  0x33   : > { %1164 = vmatmul.msk.bf16.gmra.mxu0 %vm447_vm2, %v1203_v12  ;;  %1172 = vmatmul.msk.bf16.gmra.mxu1 %vm447_vm2, %v1211_v13 }
  0x34   : > { %1180 = vmatmul.msk.bf16.gmra.mxu2 %vm447_vm2, %v1219_v14  ;;  %1188 = vmatmul.msk.bf16.gmra.mxu3 %vm447_vm2, %v1227_v15 }
  0x43   : > { %1165 = vmatmul.msk.bf16.gmra.mxu0 %vm447_vm2, %v1204_v16  ;;  %1173 = vmatmul.msk.bf16.gmra.mxu1 %vm447_vm2, %v1212_v17 }
  0x44   : > { %1181 = vmatmul.msk.bf16.gmra.mxu2 %vm447_vm2, %v1220_v18  ;;  %1189 = vmatmul.msk.bf16.gmra.mxu3 %vm447_vm2, %v1228_v19 }
  0x53   : > { %1166 = vmatmul.msk.bf16.gmra.mxu0 %vm447_vm2, %v1205_v20  ;;  %1174 = vmatmul.msk.bf16.gmra.mxu1 %vm447_vm2, %v1213_v21 }
  0x54   : > { %1182 = vmatmul.msk.bf16.gmra.mxu2 %vm447_vm2, %v1221_v22  ;;  %1190 = vmatmul.msk.bf16.gmra.mxu3 %vm447_vm2, %v1229_v23 }
  0x63   : > { %1167 = vmatmul.msk.bf16.gmra.mxu0 %vm447_vm2, %v1206_v24  ;;  %1175 = vmatmul.msk.bf16.gmra.mxu1 %vm447_vm2, %v1214_v25 }
  0x64   : > { %1183 = vmatmul.msk.bf16.gmra.mxu2 %vm447_vm2, %v1222_v26  ;;  %1191 = vmatmul.msk.bf16.gmra.mxu3 %vm447_vm2, %v1230_v27 }
  0x73   : > { %1168 = vmatmul.msk.bf16.gmra.mxu0 %vm447_vm2, %v1207_v28  ;;  %1176 = vmatmul.msk.bf16.gmra.mxu1 %vm447_vm2, %v1215_v29 }
  0x74   : > { %1184 = vmatmul.msk.bf16.gmra.mxu2 %vm447_vm2, %v1223_v30  ;;  %1192 = vmatmul.msk.bf16.gmra.mxu3 %vm447_vm2, %v1231_v31 }
  0x83   : > { %1169 = vmatmul.msk.bf16.gmra.mxu0 %vm447_vm2, %v1208_v32  ;;  %1177 = vmatmul.msk.bf16.gmra.mxu1 %vm447_vm2, %v1216_v33 }
  0x84   : > { %1185 = vmatmul.msk.bf16.gmra.mxu2 %vm447_vm2, %v1224_v34  ;;  %1193 = vmatmul.msk.bf16.gmra.mxu3 %vm447_vm2, %v1232_v35 }
  0x93   : > { %1170 = vmatmul.msk.bf16.gmra.mxu0 %vm447_vm2, %v1209_v36  ;;  %1178 = vmatmul.msk.bf16.gmra.mxu1 %vm447_vm2, %v1217_v37 }
  0x94   : > { %1186 = vmatmul.msk.bf16.gmra.mxu2 %vm447_vm2, %v1225_v38  ;;  %1194 = vmatmul.msk.bf16.gmra.mxu3 %vm447_vm2, %v1233_v39 }
  0xa0   : > { %v560_v41 = vpop.f32.mrf.mxu0  ;;  %v600_v42 = vpop.f32.mrf.mxu1 }
  0xa1   : > { %v561_v43 = vadd.f32 %v1592_v40, %v560_v41  ;;  %v601_v44 = vadd.f32 %v1592_v40, %v600_v42 }
  0xa3   : > { %v720_v45 = vmax.f32 %v561_v43, 0.0  ;;  %v736_v46 = vmax.f32 %v601_v44, 0.0 }
  0xa5   : > { %v784_v47 = vpack.c.bf16 %v720_v45, %v720_v45  ;;  %v800_v48 = vpack.c.bf16 %v736_v46, %v736_v46 }
  0xa7   : > { %849 = vst.msk [vmem:[%s1599_s9] sm:$0xf] %vm848_vm3, %v784_v47  ;;  %v640_v49 = vpop.f32.mrf.mxu2  ;;  %v680_v50 = vpop.f32.mrf.mxu3 }
  0xa8   : > { %865 = vst.msk [vmem:[%s1599_s9 + $0x40] sm:$0xf] %vm848_vm3, %v800_v48  ;;  %v641_v51 = vadd.f32 %v1592_v40, %v640_v49  ;;  %v681_v52 = vadd.f32 %v1592_v40, %v680_v50  ;;  %v562_v53 = vpop.f32.mrf.mxu0  ;;  %v602_v54 = vpop.f32.mrf.mxu1 }
  0xa9   : > { %v563_v55 = vadd.f32 %v1592_v40, %v562_v53  ;;  %v603_v56 = vadd.f32 %v1592_v40, %v602_v54 }
  0xaa   : > { %v752_v57 = vmax.f32 %v641_v51, 0.0  ;;  %v768_v58 = vmax.f32 %v681_v52, 0.0 }
  0xab   : > { %v721_v59 = vmax.f32 %v563_v55, 0.0  ;;  %v737_v60 = vmax.f32 %v603_v56, 0.0 }
  0xac   : > { %v816_v61 = vpack.c.bf16 %v752_v57, %v752_v57  ;;  %v832_v62 = vpack.c.bf16 %v768_v58, %v768_v58 }
  0xad   : > { %v785_v63 = vpack.c.bf16 %v721_v59, %v721_v59  ;;  %v801_v0 = vpack.c.bf16 %v737_v60, %v737_v60 }
  0xae   : > { %881 = vst.msk [vmem:[%s1599_s9 + $0x80] sm:$0xf] %vm848_vm3, %v816_v61 }
  0xaf   : > { %897 = vst.msk [vmem:[%s1599_s9 + $0xc0] sm:$0xf] %vm848_vm3, %v832_v62  ;;  %v642_v1 = vpop.f32.mrf.mxu2  ;;  %v682_v2 = vpop.f32.mrf.mxu3 }
  0xb0   : > { %850 = vst.msk [vmem:[%s1599_s9 + $0x4] sm:$0xf] %vm848_vm3, %v785_v63  ;;  %v643_v3 = vadd.f32 %v1592_v40, %v642_v1  ;;  %v683_v4 = vadd.f32 %v1592_v40, %v682_v2  ;;  %v565_v5 = vpop.f32.mrf.mxu0  ;;  %v605_v6 = vpop.f32.mrf.mxu1 }
  0xb1   : > { %866 = vst.msk [vmem:[%s1599_s9 + $0x44] sm:$0xf] %vm848_vm3, %v801_v0  ;;  %v566_v7 = vadd.f32 %v1592_v40, %v565_v5  ;;  %v606_v8 = vadd.f32 %v1592_v40, %v605_v6 }
  0xb2   : > { %v753_v9 = vmax.f32 %v643_v3, 0.0  ;;  %v769_v10 = vmax.f32 %v683_v4, 0.0 }
  0xb3   : > { %v722_v11 = vmax.f32 %v566_v7, 0.0  ;;  %v738_v12 = vmax.f32 %v606_v8, 0.0 }
  0xb4   : > { %v817_v13 = vpack.c.bf16 %v753_v9, %v753_v9  ;;  %v833_v14 = vpack.c.bf16 %v769_v10, %v769_v10 }
  0xb5   : > { %v786_v15 = vpack.c.bf16 %v722_v11, %v722_v11  ;;  %v802_v16 = vpack.c.bf16 %v738_v12, %v738_v12 }
  0xb6   : > { %882 = vst.msk [vmem:[%s1599_s9 + $0x84] sm:$0xf] %vm848_vm3, %v817_v13 }
  0xb7   : > { %898 = vst.msk [vmem:[%s1599_s9 + $0xc4] sm:$0xf] %vm848_vm3, %v833_v14  ;;  %v645_v17 = vpop.f32.mrf.mxu2  ;;  %v685_v18 = vpop.f32.mrf.mxu3 }
  0xb8   : > { %851 = vst.msk [vmem:[%s1599_s9 + $0x8] sm:$0xf] %vm848_vm3, %v786_v15  ;;  %v646_v19 = vadd.f32 %v1592_v40, %v645_v17  ;;  %v686_v20 = vadd.f32 %v1592_v40, %v685_v18  ;;  %v567_v21 = vpop.f32.mrf.mxu0  ;;  %v607_v22 = vpop.f32.mrf.mxu1 }
  0xb9   : > { %867 = vst.msk [vmem:[%s1599_s9 + $0x48] sm:$0xf] %vm848_vm3, %v802_v16  ;;  %v568_v23 = vadd.f32 %v1592_v40, %v567_v21  ;;  %v608_v24 = vadd.f32 %v1592_v40, %v607_v22 }
  0xba   : > { %v754_v25 = vmax.f32 %v646_v19, 0.0  ;;  %v770_v26 = vmax.f32 %v686_v20, 0.0 }
  0xbb   : > { %v723_v27 = vmax.f32 %v568_v23, 0.0  ;;  %v739_v28 = vmax.f32 %v608_v24, 0.0 }
  0xbc   : > { %v818_v29 = vpack.c.bf16 %v754_v25, %v754_v25  ;;  %v834_v30 = vpack.c.bf16 %v770_v26, %v770_v26 }
  0xbd   : > { %v787_v31 = vpack.c.bf16 %v723_v27, %v723_v27  ;;  %v803_v32 = vpack.c.bf16 %v739_v28, %v739_v28 }
  0xbe   : > { %883 = vst.msk [vmem:[%s1599_s9 + $0x88] sm:$0xf] %vm848_vm3, %v818_v29 }
  0xbf   : > { %899 = vst.msk [vmem:[%s1599_s9 + $0xc8] sm:$0xf] %vm848_vm3, %v834_v30  ;;  %v647_v33 = vpop.f32.mrf.mxu2  ;;  %v687_v34 = vpop.f32.mrf.mxu3 }
  0xc0   : > { %852 = vst.msk [vmem:[%s1599_s9 + $0xc] sm:$0xf] %vm848_vm3, %v787_v31  ;;  %v648_v35 = vadd.f32 %v1592_v40, %v647_v33  ;;  %v688_v36 = vadd.f32 %v1592_v40, %v687_v34  ;;  %v570_v37 = vpop.f32.mrf.mxu0  ;;  %v610_v38 = vpop.f32.mrf.mxu1 }
  0xc1   : > { %868 = vst.msk [vmem:[%s1599_s9 + $0x4c] sm:$0xf] %vm848_vm3, %v803_v32  ;;  %v571_v39 = vadd.f32 %v1592_v40, %v570_v37  ;;  %v611_v41 = vadd.f32 %v1592_v40, %v610_v38 }
  0xc2   : > { %v755_v42 = vmax.f32 %v648_v35, 0.0  ;;  %v771_v43 = vmax.f32 %v688_v36, 0.0 }
  0xc3   : > { %v724_v44 = vmax.f32 %v571_v39, 0.0  ;;  %v740_v45 = vmax.f32 %v611_v41, 0.0 }
  0xc4   : > { %v819_v46 = vpack.c.bf16 %v755_v42, %v755_v42  ;;  %v835_v47 = vpack.c.bf16 %v771_v43, %v771_v43 }
  0xc5   : > { %v788_v48 = vpack.c.bf16 %v724_v44, %v724_v44  ;;  %v804_v49 = vpack.c.bf16 %v740_v45, %v740_v45 }
  0xc6   : > { %884 = vst.msk [vmem:[%s1599_s9 + $0x8c] sm:$0xf] %vm848_vm3, %v819_v46 }
  0xc7   : > { %900 = vst.msk [vmem:[%s1599_s9 + $0xcc] sm:$0xf] %vm848_vm3, %v835_v47  ;;  %v650_v50 = vpop.f32.mrf.mxu2  ;;  %v690_v51 = vpop.f32.mrf.mxu3 }
  0xc8   : > { %853 = vst.msk [vmem:[%s1599_s9 + $0x10] sm:$0xf] %vm848_vm3, %v788_v48  ;;  %v651_v52 = vadd.f32 %v1592_v40, %v650_v50  ;;  %v691_v53 = vadd.f32 %v1592_v40, %v690_v51  ;;  %v572_v54 = vpop.f32.mrf.mxu0  ;;  %v612_v55 = vpop.f32.mrf.mxu1 }
  0xc9   : > { %869 = vst.msk [vmem:[%s1599_s9 + $0x50] sm:$0xf] %vm848_vm3, %v804_v49  ;;  %v573_v56 = vadd.f32 %v1592_v40, %v572_v54  ;;  %v613_v57 = vadd.f32 %v1592_v40, %v612_v55 }
  0xca   : > { %v756_v58 = vmax.f32 %v651_v52, 0.0  ;;  %v772_v59 = vmax.f32 %v691_v53, 0.0 }
  0xcb   : > { %v725_v60 = vmax.f32 %v573_v56, 0.0  ;;  %v741_v61 = vmax.f32 %v613_v57, 0.0 }
  0xcc   : > { %v820_v62 = vpack.c.bf16 %v756_v58, %v756_v58  ;;  %v836_v63 = vpack.c.bf16 %v772_v59, %v772_v59 }
  0xcd   : > { %v789_v0 = vpack.c.bf16 %v725_v60, %v725_v60  ;;  %v805_v1 = vpack.c.bf16 %v741_v61, %v741_v61 }
  0xce   : > { %885 = vst.msk [vmem:[%s1599_s9 + $0x90] sm:$0xf] %vm848_vm3, %v820_v62 }
  0xcf   : > { %901 = vst.msk [vmem:[%s1599_s9 + $0xd0] sm:$0xf] %vm848_vm3, %v836_v63  ;;  %v652_v2 = vpop.f32.mrf.mxu2  ;;  %v692_v3 = vpop.f32.mrf.mxu3 }
  0xd0   : > { %854 = vst.msk [vmem:[%s1599_s9 + $0x14] sm:$0xf] %vm848_vm3, %v789_v0  ;;  %v653_v4 = vadd.f32 %v1592_v40, %v652_v2  ;;  %v693_v5 = vadd.f32 %v1592_v40, %v692_v3  ;;  %v575_v6 = vpop.f32.mrf.mxu0  ;;  %v615_v7 = vpop.f32.mrf.mxu1 }
  0xd1   : > { %870 = vst.msk [vmem:[%s1599_s9 + $0x54] sm:$0xf] %vm848_vm3, %v805_v1  ;;  %v576_v8 = vadd.f32 %v1592_v40, %v575_v6  ;;  %v616_v9 = vadd.f32 %v1592_v40, %v615_v7 }
  0xd2   : > { %v757_v10 = vmax.f32 %v653_v4, 0.0  ;;  %v773_v11 = vmax.f32 %v693_v5, 0.0 }
  0xd3   : > { %v726_v12 = vmax.f32 %v576_v8, 0.0  ;;  %v742_v13 = vmax.f32 %v616_v9, 0.0 }
  0xd4   : > { %v821_v14 = vpack.c.bf16 %v757_v10, %v757_v10  ;;  %v837_v15 = vpack.c.bf16 %v773_v11, %v773_v11 }
  0xd5   : > { %v790_v16 = vpack.c.bf16 %v726_v12, %v726_v12  ;;  %v806_v17 = vpack.c.bf16 %v742_v13, %v742_v13 }
  0xd6   : > { %886 = vst.msk [vmem:[%s1599_s9 + $0x94] sm:$0xf] %vm848_vm3, %v821_v14 }
  0xd7   : > { %902 = vst.msk [vmem:[%s1599_s9 + $0xd4] sm:$0xf] %vm848_vm3, %v837_v15  ;;  %v655_v18 = vpop.f32.mrf.mxu2  ;;  %v695_v19 = vpop.f32.mrf.mxu3 }
  0xd8   : > { %855 = vst.msk [vmem:[%s1599_s9 + $0x18] sm:$0xf] %vm848_vm3, %v790_v16  ;;  %v656_v20 = vadd.f32 %v1592_v40, %v655_v18  ;;  %v696_v21 = vadd.f32 %v1592_v40, %v695_v19  ;;  %v577_v22 = vpop.f32.mrf.mxu0  ;;  %v617_v23 = vpop.f32.mrf.mxu1 }
  0xd9   : > { %871 = vst.msk [vmem:[%s1599_s9 + $0x58] sm:$0xf] %vm848_vm3, %v806_v17  ;;  %v578_v24 = vadd.f32 %v1592_v40, %v577_v22  ;;  %v618_v25 = vadd.f32 %v1592_v40, %v617_v23 }
  0xda   : > { %v758_v26 = vmax.f32 %v656_v20, 0.0  ;;  %v774_v27 = vmax.f32 %v696_v21, 0.0 }
  0xdb   : > { %v727_v28 = vmax.f32 %v578_v24, 0.0  ;;  %v743_v29 = vmax.f32 %v618_v25, 0.0 }
  0xdc   : > { %v822_v30 = vpack.c.bf16 %v758_v26, %v758_v26  ;;  %v838_v31 = vpack.c.bf16 %v774_v27, %v774_v27 }
  0xdd   : > { %v791_v32 = vpack.c.bf16 %v727_v28, %v727_v28  ;;  %v807_v33 = vpack.c.bf16 %v743_v29, %v743_v29 }
  0xde   : > { %887 = vst.msk [vmem:[%s1599_s9 + $0x98] sm:$0xf] %vm848_vm3, %v822_v30 }
  0xdf   : > { %903 = vst.msk [vmem:[%s1599_s9 + $0xd8] sm:$0xf] %vm848_vm3, %v838_v31  ;;  %v657_v34 = vpop.f32.mrf.mxu2  ;;  %v697_v35 = vpop.f32.mrf.mxu3 }
  0xe0   : > { %856 = vst.msk [vmem:[%s1599_s9 + $0x1c] sm:$0xf] %vm848_vm3, %v791_v32  ;;  %v658_v36 = vadd.f32 %v1592_v40, %v657_v34  ;;  %v698_v37 = vadd.f32 %v1592_v40, %v697_v35  ;;  %v580_v38 = vpop.f32.mrf.mxu0  ;;  %v620_v39 = vpop.f32.mrf.mxu1 }
  0xe1   : > { %872 = vst.msk [vmem:[%s1599_s9 + $0x5c] sm:$0xf] %vm848_vm3, %v807_v33  ;;  %v581_v41 = vadd.f32 %v1592_v40, %v580_v38  ;;  %v621_v42 = vadd.f32 %v1592_v40, %v620_v39 }
  0xe2   : > { %v759_v43 = vmax.f32 %v658_v36, 0.0  ;;  %v775_v44 = vmax.f32 %v698_v37, 0.0 }
  0xe3   : > { %v728_v45 = vmax.f32 %v581_v41, 0.0  ;;  %v744_v46 = vmax.f32 %v621_v42, 0.0 }
  0xe4   : > { %v823_v47 = vpack.c.bf16 %v759_v43, %v759_v43  ;;  %v839_v48 = vpack.c.bf16 %v775_v44, %v775_v44 }
  0xe5   : > { %v792_v49 = vpack.c.bf16 %v728_v45, %v728_v45  ;;  %v808_v50 = vpack.c.bf16 %v744_v46, %v744_v46 }
  0xe6   : > { %888 = vst.msk [vmem:[%s1599_s9 + $0x9c] sm:$0xf] %vm848_vm3, %v823_v47 }
  0xe7   : > { %904 = vst.msk [vmem:[%s1599_s9 + $0xdc] sm:$0xf] %vm848_vm3, %v839_v48  ;;  %v660_v51 = vpop.f32.mrf.mxu2  ;;  %v700_v52 = vpop.f32.mrf.mxu3 }
  0xe8   : > { %857 = vst.msk [vmem:[%s1599_s9 + $0x20] sm:$0xf] %vm848_vm3, %v792_v49  ;;  %v661_v53 = vadd.f32 %v1592_v40, %v660_v51  ;;  %v701_v54 = vadd.f32 %v1592_v40, %v700_v52  ;;  %v582_v55 = vpop.f32.mrf.mxu0  ;;  %v622_v56 = vpop.f32.mrf.mxu1 }
  0xe9   : > { %873 = vst.msk [vmem:[%s1599_s9 + $0x60] sm:$0xf] %vm848_vm3, %v808_v50  ;;  %v583_v57 = vadd.f32 %v1592_v40, %v582_v55  ;;  %v623_v58 = vadd.f32 %v1592_v40, %v622_v56 }
  0xea   : > { %v760_v59 = vmax.f32 %v661_v53, 0.0  ;;  %v776_v60 = vmax.f32 %v701_v54, 0.0 }
  0xeb   : > { %v729_v61 = vmax.f32 %v583_v57, 0.0  ;;  %v745_v62 = vmax.f32 %v623_v58, 0.0 }
  0xec   : > { %v824_v63 = vpack.c.bf16 %v760_v59, %v760_v59  ;;  %v840_v0 = vpack.c.bf16 %v776_v60, %v776_v60 }
  0xed   : > { %v793_v1 = vpack.c.bf16 %v729_v61, %v729_v61  ;;  %v809_v2 = vpack.c.bf16 %v745_v62, %v745_v62 }
  0xee   : > { %889 = vst.msk [vmem:[%s1599_s9 + $0xa0] sm:$0xf] %vm848_vm3, %v824_v63 }
  0xef   : > { %905 = vst.msk [vmem:[%s1599_s9 + $0xe0] sm:$0xf] %vm848_vm3, %v840_v0  ;;  %v662_v3 = vpop.f32.mrf.mxu2  ;;  %v702_v4 = vpop.f32.mrf.mxu3 }
  0xf0   : > { %858 = vst.msk [vmem:[%s1599_s9 + $0x24] sm:$0xf] %vm848_vm3, %v793_v1  ;;  %v663_v5 = vadd.f32 %v1592_v40, %v662_v3  ;;  %v703_v6 = vadd.f32 %v1592_v40, %v702_v4  ;;  %v585_v7 = vpop.f32.mrf.mxu0  ;;  %v625_v8 = vpop.f32.mrf.mxu1 }
  0xf1   : > { %874 = vst.msk [vmem:[%s1599_s9 + $0x64] sm:$0xf] %vm848_vm3, %v809_v2  ;;  %v586_v9 = vadd.f32 %v1592_v40, %v585_v7  ;;  %v626_v10 = vadd.f32 %v1592_v40, %v625_v8 }
  0xf2   : > { %v761_v11 = vmax.f32 %v663_v5, 0.0  ;;  %v777_v12 = vmax.f32 %v703_v6, 0.0 }
  0xf3   : > { %v730_v13 = vmax.f32 %v586_v9, 0.0  ;;  %v746_v14 = vmax.f32 %v626_v10, 0.0 }
  0xf4   : > { %v825_v15 = vpack.c.bf16 %v761_v11, %v761_v11  ;;  %v841_v16 = vpack.c.bf16 %v777_v12, %v777_v12 }
  0xf5   : > { %v794_v17 = vpack.c.bf16 %v730_v13, %v730_v13  ;;  %v810_v18 = vpack.c.bf16 %v746_v14, %v746_v14 }
  0xf6   : > { %890 = vst.msk [vmem:[%s1599_s9 + $0xa4] sm:$0xf] %vm848_vm3, %v825_v15 }
  0xf7   : > { %906 = vst.msk [vmem:[%s1599_s9 + $0xe4] sm:$0xf] %vm848_vm3, %v841_v16  ;;  %v665_v19 = vpop.f32.mrf.mxu2  ;;  %v705_v20 = vpop.f32.mrf.mxu3 }
  0xf8   : > { %859 = vst.msk [vmem:[%s1599_s9 + $0x28] sm:$0xf] %vm848_vm3, %v794_v17  ;;  %v666_v21 = vadd.f32 %v1592_v40, %v665_v19  ;;  %v706_v22 = vadd.f32 %v1592_v40, %v705_v20  ;;  %v587_v23 = vpop.f32.mrf.mxu0  ;;  %v627_v24 = vpop.f32.mrf.mxu1 }
  0xf9   : > { %875 = vst.msk [vmem:[%s1599_s9 + $0x68] sm:$0xf] %vm848_vm3, %v810_v18  ;;  %v588_v25 = vadd.f32 %v1592_v40, %v587_v23  ;;  %v628_v26 = vadd.f32 %v1592_v40, %v627_v24 }
  0xfa   : > { %v762_v27 = vmax.f32 %v666_v21, 0.0  ;;  %v778_v28 = vmax.f32 %v706_v22, 0.0 }
  0xfb   : > { %v731_v29 = vmax.f32 %v588_v25, 0.0  ;;  %v747_v30 = vmax.f32 %v628_v26, 0.0 }
  0xfc   : > { %v826_v31 = vpack.c.bf16 %v762_v27, %v762_v27  ;;  %v842_v32 = vpack.c.bf16 %v778_v28, %v778_v28 }
  0xfd   : > { %v795_v33 = vpack.c.bf16 %v731_v29, %v731_v29  ;;  %v811_v34 = vpack.c.bf16 %v747_v30, %v747_v30 }
  0xfe   : > { %891 = vst.msk [vmem:[%s1599_s9 + $0xa8] sm:$0xf] %vm848_vm3, %v826_v31 }
  0xff   : > { %907 = vst.msk [vmem:[%s1599_s9 + $0xe8] sm:$0xf] %vm848_vm3, %v842_v32  ;;  %v667_v35 = vpop.f32.mrf.mxu2  ;;  %v707_v36 = vpop.f32.mrf.mxu3 }
 0x100   : > { %860 = vst.msk [vmem:[%s1599_s9 + $0x2c] sm:$0xf] %vm848_vm3, %v795_v33  ;;  %v668_v37 = vadd.f32 %v1592_v40, %v667_v35  ;;  %v708_v38 = vadd.f32 %v1592_v40, %v707_v36  ;;  %v590_v39 = vpop.f32.mrf.mxu0  ;;  %v630_v41 = vpop.f32.mrf.mxu1 }
 0x101   : > { %876 = vst.msk [vmem:[%s1599_s9 + $0x6c] sm:$0xf] %vm848_vm3, %v811_v34  ;;  %v591_v42 = vadd.f32 %v1592_v40, %v590_v39  ;;  %v631_v43 = vadd.f32 %v1592_v40, %v630_v41 }
 0x102   : > { %v763_v44 = vmax.f32 %v668_v37, 0.0  ;;  %v779_v45 = vmax.f32 %v708_v38, 0.0 }
 0x103   : > { %v732_v46 = vmax.f32 %v591_v42, 0.0  ;;  %v748_v47 = vmax.f32 %v631_v43, 0.0 }
 0x104   : > { %v827_v48 = vpack.c.bf16 %v763_v44, %v763_v44  ;;  %v843_v49 = vpack.c.bf16 %v779_v45, %v779_v45 }
 0x105   : > { %v796_v50 = vpack.c.bf16 %v732_v46, %v732_v46  ;;  %v812_v51 = vpack.c.bf16 %v748_v47, %v748_v47 }
 0x106   : > { %892 = vst.msk [vmem:[%s1599_s9 + $0xac] sm:$0xf] %vm848_vm3, %v827_v48 }
 0x107   : > { %908 = vst.msk [vmem:[%s1599_s9 + $0xec] sm:$0xf] %vm848_vm3, %v843_v49  ;;  %v670_v52 = vpop.f32.mrf.mxu2  ;;  %v710_v53 = vpop.f32.mrf.mxu3 }
 0x108   : > { %861 = vst.msk [vmem:[%s1599_s9 + $0x30] sm:$0xf] %vm848_vm3, %v796_v50  ;;  %v671_v54 = vadd.f32 %v1592_v40, %v670_v52  ;;  %v711_v55 = vadd.f32 %v1592_v40, %v710_v53  ;;  %v592_v56 = vpop.f32.mrf.mxu0  ;;  %v632_v57 = vpop.f32.mrf.mxu1 }
 0x109   : > { %877 = vst.msk [vmem:[%s1599_s9 + $0x70] sm:$0xf] %vm848_vm3, %v812_v51  ;;  %v593_v58 = vadd.f32 %v1592_v40, %v592_v56  ;;  %v633_v59 = vadd.f32 %v1592_v40, %v632_v57 }
 0x10a   : > { %v764_v60 = vmax.f32 %v671_v54, 0.0  ;;  %v780_v61 = vmax.f32 %v711_v55, 0.0 }
 0x10b   : > { %v733_v62 = vmax.f32 %v593_v58, 0.0  ;;  %v749_v63 = vmax.f32 %v633_v59, 0.0 }
 0x10c   : > { %v828_v0 = vpack.c.bf16 %v764_v60, %v764_v60  ;;  %v844_v1 = vpack.c.bf16 %v780_v61, %v780_v61 }
 0x10d   : > { %v797_v2 = vpack.c.bf16 %v733_v62, %v733_v62  ;;  %v813_v3 = vpack.c.bf16 %v749_v63, %v749_v63 }
 0x10e   : > { %893 = vst.msk [vmem:[%s1599_s9 + $0xb0] sm:$0xf] %vm848_vm3, %v828_v0 }
 0x10f   : > { %909 = vst.msk [vmem:[%s1599_s9 + $0xf0] sm:$0xf] %vm848_vm3, %v844_v1  ;;  %v672_v4 = vpop.f32.mrf.mxu2  ;;  %v712_v5 = vpop.f32.mrf.mxu3 }
 0x110   : > { %862 = vst.msk [vmem:[%s1599_s9 + $0x34] sm:$0xf] %vm848_vm3, %v797_v2  ;;  %v673_v6 = vadd.f32 %v1592_v40, %v672_v4  ;;  %v713_v7 = vadd.f32 %v1592_v40, %v712_v5  ;;  %v595_v8 = vpop.f32.mrf.mxu0  ;;  %v635_v9 = vpop.f32.mrf.mxu1 }
 0x111   : > { %878 = vst.msk [vmem:[%s1599_s9 + $0x74] sm:$0xf] %vm848_vm3, %v813_v3  ;;  %v596_v10 = vadd.f32 %v1592_v40, %v595_v8  ;;  %v636_v11 = vadd.f32 %v1592_v40, %v635_v9 }
 0x112   : > { %v765_v12 = vmax.f32 %v673_v6, 0.0  ;;  %v781_v13 = vmax.f32 %v713_v7, 0.0 }
 0x113   : > { %v734_v14 = vmax.f32 %v596_v10, 0.0  ;;  %v750_v15 = vmax.f32 %v636_v11, 0.0 }
 0x114   : > { %v829_v16 = vpack.c.bf16 %v765_v12, %v765_v12  ;;  %v845_v17 = vpack.c.bf16 %v781_v13, %v781_v13 }
 0x115   : > { %v798_v18 = vpack.c.bf16 %v734_v14, %v734_v14  ;;  %v814_v19 = vpack.c.bf16 %v750_v15, %v750_v15 }
 0x116   : > { %894 = vst.msk [vmem:[%s1599_s9 + $0xb4] sm:$0xf] %vm848_vm3, %v829_v16 }
 0x117   : > { %910 = vst.msk [vmem:[%s1599_s9 + $0xf4] sm:$0xf] %vm848_vm3, %v845_v17  ;;  %v675_v20 = vpop.f32.mrf.mxu2  ;;  %v715_v21 = vpop.f32.mrf.mxu3 }
 0x118   : > { %863 = vst.msk [vmem:[%s1599_s9 + $0x38] sm:$0xf] %vm848_vm3, %v798_v18  ;;  %v676_v22 = vadd.f32 %v1592_v40, %v675_v20  ;;  %v716_v23 = vadd.f32 %v1592_v40, %v715_v21  ;;  %v597_v24 = vpop.f32.mrf.mxu0  ;;  %v637_v25 = vpop.f32.mrf.mxu1 }
 0x119   : > { %879 = vst.msk [vmem:[%s1599_s9 + $0x78] sm:$0xf] %vm848_vm3, %v814_v19  ;;  %v598_v26 = vadd.f32 %v1592_v40, %v597_v24  ;;  %v638_v27 = vadd.f32 %v1592_v40, %v637_v25 }
 0x11a   : > { %v766_v28 = vmax.f32 %v676_v22, 0.0  ;;  %v782_v29 = vmax.f32 %v716_v23, 0.0 }
 0x11b   : > { %v735_v30 = vmax.f32 %v598_v26, 0.0  ;;  %v751_v31 = vmax.f32 %v638_v27, 0.0 }
 0x11c   : > { %v830_v32 = vpack.c.bf16 %v766_v28, %v766_v28  ;;  %v846_v33 = vpack.c.bf16 %v782_v29, %v782_v29 }
 0x11d   : > { %v799_v34 = vpack.c.bf16 %v735_v30, %v735_v30  ;;  %v815_v35 = vpack.c.bf16 %v751_v31, %v751_v31 }
 0x11e   : > { %895 = vst.msk [vmem:[%s1599_s9 + $0xb8] sm:$0xf] %vm848_vm3, %v830_v32 }
 0x11f   : > { %911 = vst.msk [vmem:[%s1599_s9 + $0xf8] sm:$0xf] %vm848_vm3, %v846_v33  ;;  %v677_v36 = vpop.f32.mrf.mxu2  ;;  %v717_v37 = vpop.f32.mrf.mxu3 }
 0x120   : > { %864 = vst.msk [vmem:[%s1599_s9 + $0x3c] sm:$0xf] %vm848_vm3, %v799_v34  ;;  %v678_v38 = vadd.f32 %v1592_v40, %v677_v36  ;;  %v718_v39 = vadd.f32 %v1592_v40, %v717_v37 }
 0x121   : > { %880 = vst.msk [vmem:[%s1599_s9 + $0x7c] sm:$0xf] %vm848_vm3, %v815_v35 }
 0x122   : > { %v767_v41 = vmax.f32 %v678_v38, 0.0  ;;  %v783_v42 = vmax.f32 %v718_v39, 0.0 }
 0x124   : > { %v831_v43 = vpack.c.bf16 %v767_v41, %v767_v41  ;;  %v847_v44 = vpack.c.bf16 %v783_v42, %v783_v42 }
 0x126   : > { %896 = vst.msk [vmem:[%s1599_s9 + $0xbc] sm:$0xf] %vm848_vm3, %v831_v43 }
 0x127   : > { %912 = vst.msk [vmem:[%s1599_s9 + $0xfc] sm:$0xf] %vm848_vm3, %v847_v44 }
 0x128   : > { %1345 = shalt.err (!%p1342_p7)
}
 0x129   : > { %s1415_s7 = smov 64   ;;  %s1416_s9 = smov 4  }
 0x12a   : > { %1243 = dma.vmem_to_hbm [thread:$0]  (%p1488_p3), %s930_s27, 4096, %s932_s28, %s914_s29, %s1415_s7, %s1415_s7, %s1416_s9  }
 0x12b PF: > { %p1249_p9 = scmp.ge.s32.totalorder %s1412_s19, 2  ;;  %s946_s15 = sand.u32 1, %s1384_s12  }
 0x12c   : > { %s947_s16 = scalar_lea.sflag [#allocation3], %s946_s15 }
 0x12d   : > { %p1246_p10 = pnand %p1249_p9, %p1497_p8 }
 0x12f   : > { %p1247_p11 = pneg %p1246_p10 }
 0x131   : > { %1379 = dma.done.wait (%p1247_p11), %s947_s16, 4096  }
 0x132   : > { %1381 = vsyncadd (%p1247_p11), %s947_s16, 4294963200  ;;  %s16_s19 = sadd.s32 1, %s1412_s19   ;;  %s1843_s12 = smov %s1388_s13 }
 0x133   : > { %p13_p12 = scmp.ge.s32.totalorder %s16_s19, 6   ;;  %s1844_s13 = smov %s1392_s14 }
 0x134   : > { %s1845_s14 = smov %s1506_s30  ;;  %s1846_s15 = smov %s1404_s17 }
 0x135   : > { %s1847_s16 = smov %s1408_s18  ;;  %s1848_s17 = smov %s1851_s22 }
 0x136   : > { %s1849_s18 = smov %s1855_s23  ;;  %15 = sbr.rel (!%p13_p12) target bundleno = 5 (0x5), region = 67 }
 0x13b   :  { %953 = vsyncpa [#allocation3], 1 }
 0x13c   :  { %955 = vsyncpa [#allocation3 + $0x1], 1 }

</bundles_post_ra>
